<compile_context>
chip_gen: v5e
topology: v5e:2x2
jax: 0.10.0
libtpu: 0.0.40
codegen_flags: <defaults>
</compile_context>

<pallas_src>
import jax
import jax.numpy as jnp
from jax.experimental import pallas as pl
from jax.experimental.pallas import tpu as pltpu


def _round_up(x, mult):
    return ((x + mult - 1) // mult) * mult


def adapt_net_kernel(data_ref, wT_ref, o_ref):
    # Single MXU push: (TB, in_dim) @ (in_dim, n_tot), f32 accumulation.
    o_ref[...] = jnp.dot(
        data_ref[...], wT_ref[...], preferred_element_type=jnp.float32
    ).astype(o_ref.dtype)


def adapt_net_forward(data, del_A_weight, del_B_weight, *, n_tot, m,
                      first_obs_const, block_batch=1024):
    """data: (B, n_tot + m*n_tot). Returns del_z_pred: (B, n_tot)."""
    foc = int(first_obs_const)
    in_dim = n_tot + m * n_tot
    assert data.shape[1] == in_dim, (data.shape, in_dim)

    # Fused weight:  W = [del_A_matrix | del_B_matrix]  (n_tot, in_dim), with
    # `foc` zero rows prepended (construct_del_matrix_ semantics).  Then
    #   Z @ A.T + ZU @ B.T == data @ W.T .
    # Transpose once here (plain XLA op, outside the kernel) so the kernel
    # sees the canonical (K, N) operand.
    w_body = jnp.concatenate([del_A_weight, del_B_weight], axis=1)         # (n_tot-foc, in_dim)
    W = jnp.concatenate(
        [jnp.zeros((foc, in_dim), dtype=w_body.dtype), w_body], axis=0)    # (n_tot, in_dim)
    W_T = W.T.astype(data.dtype)                                           # (in_dim, n_tot)

    B = data.shape[0]
    # Batch tile: multiple of 8 sublanes; big enough to amortize the ~0.35 us
    # per-grid-step overhead on large batches while keeping the
    # double-buffered working set (~2 * TB * (in_dim + n_tot) * 4 B) tiny.
    TB = min(int(block_batch), _round_up(B, 8))
    TB = _round_up(TB, 8)
    Bp = _round_up(B, TB)
    if Bp != B:
        data = jnp.pad(data, ((0, Bp - B), (0, 0)))

    grid = (Bp // TB,)

    out = pl.pallas_call(
        adapt_net_kernel,
        out_shape=jax.ShapeDtypeStruct((Bp, n_tot), data.dtype),
        grid=grid,
        in_specs=[
            # Batch-tiled input: pipelined HBM->VMEM DMA per grid step.
            pl.BlockSpec((TB, in_dim), lambda i: (i, 0)),
            # Fused, pre-transposed weight: constant block index -> resident
            # in VMEM, not re-DMA'd each step.
            pl.BlockSpec((in_dim, n_tot), lambda i: (0, 0)),
        ],
        # TODO(synk): output last dim (n_tot < 128) forces masked vst stores;
        # padding N to 128 would make stores lane-dense but ~3x total HBM
        # traffic in this mem-bound kernel, so it is intentionally left as-is.
        out_specs=pl.BlockSpec((TB, n_tot), lambda i: (i, 0)),
        compiler_params=pltpu.CompilerParams(
            dimension_semantics=("parallel",)),
    )(data, W_T)

    if Bp != B:
        out = out[:B]
    return out


def _reference(data, del_A_weight, del_B_weight, *, n_tot, m, first_obs_const):
    foc = int(first_obs_const)
    del_A_matrix = jnp.concatenate(
        [jnp.zeros((foc, n_tot), del_A_weight.dtype), del_A_weight], axis=0)
    del_B_matrix = jnp.concatenate(
        [jnp.zeros((foc, m * n_tot), del_B_weight.dtype), del_B_weight], axis=0)
    Z, ZU = data[:, :n_tot], data[:, n_tot:]
    return Z @ del_A_matrix.T + ZU @ del_B_matrix.T


if __name__ == "__main__":
    # adapt_net_params (small, deterministic)
    state_dim = 4          # n
    ctrl_dim = 2           # m
    lift_dim = 8
    first_obs_const = True
    override_C = True

    n_tot = int(first_obs_const) + lift_dim + (state_dim if override_C else 0)  # 13
    m = ctrl_dim
    foc = int(first_obs_const)
    in_dim = n_tot + m * n_tot  # 39

    key = jax.random.PRNGKey(0)
    k_data, k_A, k_B, k_data2 = jax.random.split(key, 4)

    # Module zero-initializes these weights; use small deterministic random
    # values so the kernel compute is non-trivial.
    del_A_weight = 0.1 * jax.random.normal(k_A, (n_tot - foc, n_tot), dtype=jnp.float32)
    del_B_weight = 0.1 * jax.random.normal(k_B, (n_tot - foc, m * n_tot), dtype=jnp.float32)

    # --- Test 1: small batch (single grid step) ---
    batch = 8
    data = jax.random.normal(k_data, (batch, in_dim), dtype=jnp.float32)
    out = adapt_net_forward(
        data, del_A_weight, del_B_weight,
        n_tot=n_tot, m=m, first_obs_const=first_obs_const)
    out = jax.block_until_ready(out)
    ref = _reference(data, del_A_weight, del_B_weight,
                     n_tot=n_tot, m=m, first_obs_const=first_obs_const)
    assert out.shape == (batch, n_tot), out.shape
    assert jnp.allclose(out, ref, atol=1e-5, rtol=1e-5), float(jnp.max(jnp.abs(out - ref)))

    # --- Test 2: batch not a multiple of the tile -> padding + multi-step grid ---
    batch2 = 300
    data2 = jax.random.normal(k_data2, (batch2, in_dim), dtype=jnp.float32)
    out2 = adapt_net_forward(
        data2, del_A_weight, del_B_weight,
        n_tot=n_tot, m=m, first_obs_const=first_obs_const, block_batch=128)
    out2 = jax.block_until_ready(out2)
    ref2 = _reference(data2, del_A_weight, del_B_weight,
                      n_tot=n_tot, m=m, first_obs_const=first_obs_const)
    assert out2.shape == (batch2, n_tot), out2.shape
    assert jnp.allclose(out2, ref2, atol=1e-5, rtol=1e-5), float(jnp.max(jnp.abs(out2 - ref2)))

    print("KERNEL_OK")
</pallas_src>

<mosaic_0001>
module attributes {stable_mosaic.version = 11 : i64} {
  func.func @adapt_net_kernel(%arg0: i32, %arg1: memref<8x39xf32, #tpu.memory_space<vmem>>, %arg2: memref<39x13xf32, #tpu.memory_space<vmem>>, %arg3: memref<8x13xf32, #tpu.memory_space<vmem>>) attributes {dimension_semantics = [#tpu.dimension_semantics<parallel>], iteration_bounds = array<i64: 1>, scalar_prefetch = 0 : i64, scratch_operands = 0 : i64, tpu.core_type = #tpu.core_type<tc>, window_params = [{transform_indices = @transform_0, window_bounds = array<i64: 8, 39>}, {pipeline_mode = #tpu.pipeline_mode<synchronous>, transform_indices = @transform_1, window_bounds = array<i64: 39, 13>}, {transform_indices = @transform_2, window_bounds = array<i64: 8, 13>}]} {
    %c0 = arith.constant 0 : index
    %c0_0 = arith.constant 0 : index
    %0 = vector.load %arg1[%c0, %c0_0] : memref<8x39xf32, #tpu.memory_space<vmem>>, vector<8x39xf32>
    %c0_1 = arith.constant 0 : index
    %c0_2 = arith.constant 0 : index
    %1 = vector.load %arg2[%c0_1, %c0_2] : memref<39x13xf32, #tpu.memory_space<vmem>>, vector<39x13xf32>
    %cst = arith.constant dense<0.000000e+00> : vector<8x13xf32>
    %2 = tpu.matmul %0, %1, %cst {dimension_numbers = #tpu.dot_dimension_numbers<[1], [0], [0], [1], [0, 0, 1, 1], [], []>} : vector<8x39xf32>, vector<39x13xf32>, vector<8x13xf32> -> vector<8x13xf32>
    %c0_3 = arith.constant 0 : index
    %c0_4 = arith.constant 0 : index
    %3 = vector.load %arg3[%c0_3, %c0_4] : memref<8x13xf32, #tpu.memory_space<vmem>>, vector<8x13xf32>
    tpu.vector_store %arg3[%c0_3, %c0_4], %2 {strides = array<i32>} : memref<8x13xf32, #tpu.memory_space<vmem>>, vector<8x13xf32>,
    return
  }
  func.func @transform_0(%arg0: i32) -> (i32, i32) {
    %c0_i32 = arith.constant 0 : i32
    %c0_i32_0 = arith.constant 0 : i32
    return %arg0, %c0_i32 : i32, i32
  }
  func.func @transform_1(%arg0: i32) -> (i32, i32) {
    %c0_i32 = arith.constant 0 : i32
    %c0_i32_0 = arith.constant 0 : i32
    %c0_i32_1 = arith.constant 0 : i32
    return %c0_i32, %c0_i32_0 : i32, i32
  }
  func.func @transform_2(%arg0: i32) -> (i32, i32) {
    %c0_i32 = arith.constant 0 : i32
    %c0_i32_0 = arith.constant 0 : i32
    return %arg0, %c0_i32 : i32, i32
  }
}

</mosaic_0001>

<bundles_post_ra>
// kernel: tpu_custom_call.1
= control target key start
LH: loop header
LB: loop body
LE: loop exit
PB: predicated region body
PF: predicated region fallthrough
CT: control target
= control target key end

     0   :  { %vm22_vm0 = vcmask 1046528   ;;  %s130_s0 = inlined_call_operand.vmem [shape: f32[8,39], index: 0, kind: input, shape index: {}]   ;;  %s131_s1 = inlined_call_operand.vmem [shape: f32[39,13], index: 1, kind: input, shape index: {}]   ;;  %s132_s2 = inlined_call_operand.hbm [shape: f32[8,13], index: 2, kind: output, shape index: {}]  }
   0x1   :  { %v17_v0 = vld [vmem:[%s131_s1 + $0x20] sm:$0x7f]  ;;  %v16_v1 = vld [vmem:[%s131_s1 + $0x18] sm:$0xff]  ;;  %v15_v2 = vld [vmem:[%s131_s1 + $0x10] sm:$0xff] }
   0x2   :  { %64 = vmatpush.msk.msra.mxu0 %vm22_vm0, %v17_v0 }
   0x3   :  { %7 = vsyncpa [#allocation3], 0  ;;  %v14_v3 = vld [vmem:[%s131_s1 + $0x8] sm:$0xff]  ;;  %v13_v4 = vld [vmem:[%s131_s1] sm:$0xff]  ;;  %vm18_vm1 = vcmask 318464   ;;  %s93_s21 = smov [#allocation2]  }
   0x4   :  { %38 = vmatpush.msra.mxu0 %v16_v1  ;;  %v12_v5 = vld [vmem:[%s130_s0] sm:$0xff]  ;;  %s53_s22 = sshll.u32 %s93_s21, 4  ;;  %s55_s25 = sshll.u32 %s132_s2, 4  ;;  %vm46_vm2 = vcmask 105472   ;;  %s54_s22 = int_to_ptr.vmem [resolvable:$true] %s53_s22  ;;  %s56_s25 = int_to_ptr.hbm [resolvable:$true] %s55_s25 }
   0x6   :  { %39 = vmatpush.msra.mxu0 %v15_v2 }
   0x8   :  { %40 = vmatpush.msra.mxu0 %v14_v3 }
   0xa   :  { %41 = vmatpush.msra.mxu0 %v13_v4 }
   0xb   :  { %65 = vmatmul.msk.f32.vlgmr.msra.gmra.mxu0 %vm18_vm1, %v12_v5 }
  0x88   :  { %v43_v6 = vpop.f32.mrf.mxu0 }
  0x89   :  { %47 = vst.msk [vmem:[#allocation2] sm:$0xff] %vm46_vm2, %v43_v6 }
  0x8a   :  { %58 = dma.vmem_to_hbm [thread:$0]  %s54_s22, 128, %s56_s25, [#allocation3]  }
  0x8b   :  { %91 = dma.done.wait [#allocation3], 128  }
  0x8c   :  { %92 = vsyncadd [#allocation3], 4294967168 }
  0x8d   :  { %63 = vsyncpa [#allocation3], 1 }

</bundles_post_ra>
